<compile_context>
chip_gen: v7x
topology: tpu7x:2x2x1
jax: 0.10.0
libtpu: 0.0.40
codegen_flags: <defaults>
</compile_context>

<pallas_src>
import functools

import jax
import jax.numpy as jnp
from jax import lax
from jax.experimental import pallas as pl
from jax.experimental.pallas import tpu as pltpu

GAMMA = 2.0
ALPHA = 0.25
LANES = 128                    # TPU lane width (last dim)
CHUNK_ROWS = 512               # rows per inner sub-chunk (256 KiB f32 temporaries)
TM_MAX = 8192                  # max rows per DMA tile (4 MiB f32 per input tile)
NUM_CORE_SPLITS = 2            # leading "parallel" grid axis (megacore on v7x)
VMEM_LIMIT_BYTES = 32 * 1024 * 1024


def _round_up(x, m):
    return -(-x // m) * m


def _focal_partial_kernel(pred_ref, targ_ref, out_ref, *, gamma, alpha, chunk,
                          tiles_per_split, valid_rows, rem, needs_mask):
    """Accumulate an (8, LANES) partial sum of the focal loss into out_ref."""
    c = pl.program_id(0)
    j = pl.program_id(1)

    @pl.when(j == 0)
    def _():
        out_ref[...] = jnp.zeros_like(out_ref)

    tm = pred_ref.shape[0]
    n_chunks = tm // chunk                      # static
    tile_row0 = (c * tiles_per_split + j) * tm  # logical first row of this tile

    def chunk_body(ci, acc):
        r0 = pl.multiple_of(ci * chunk, chunk)
        x = pred_ref[pl.ds(r0, chunk), :].astype(jnp.float32)
        t = targ_ref[pl.ds(r0, chunk), :].astype(jnp.float32)

        # exp-based sigmoid: accurate down to the same underflow point as the
        # torch/jax reference (a tanh-based sigmoid flushes to 0 at x ~ -18
        # and would poison log(pt) for plausible data).
        em = jnp.exp(-x)
        p = 1.0 / (1.0 + em)
        pt = p * t + (1.0 - p) * (1.0 - t)
        one_m_pt = 1.0 - pt

        if gamma == 2.0:
            focal_weight = one_m_pt * one_m_pt              # VPU square, no pow
        elif float(gamma).is_integer() and gamma >= 0.0:
            focal_weight = jnp.ones_like(one_m_pt)
            for _ in range(int(gamma)):                      # small static unroll
                focal_weight = focal_weight * one_m_pt
        else:
            focal_weight = one_m_pt ** jnp.float32(gamma)    # general (2 extra EUP)

        # NOTE: log(pt) intentionally unguarded to match the PyTorch reference.
        loss = (-alpha) * jnp.log(pt) * focal_weight         # (chunk, LANES) f32

        if needs_mask:
            # Zero every element whose flat index >= n.  Partial / fully-OOB
            # tiles read unspecified data; jnp.where is a select, so NaN/Inf
            # in the masked-out branch cannot leak through.
            rows = tile_row0 + ci * chunk + lax.broadcasted_iota(
                jnp.int32, (chunk, LANES), 0)
            if rem == 0:
                mask = rows < valid_rows
            else:
                lanes = lax.broadcasted_iota(jnp.int32, (chunk, LANES), 1)
                mask = (rows < valid_rows) | ((rows == valid_rows) & (lanes < rem))
            loss = jnp.where(mask, loss, 0.0)

        # Reduce over the leading (sublane-block) axis only: pure VPU adds.
        # Cross-lane reduction is deferred to the wrapper (tiny).
        return acc + jnp.sum(loss.reshape(chunk // 8, 8, LANES), axis=0)

    acc = lax.fori_loop(0, n_chunks, chunk_body,
                        jnp.zeros((8, LANES), jnp.float32),
                        unroll=(n_chunks <= 4))
    out_ref[...] += acc


def binary_focal_loss(pred, target, gamma=GAMMA, alpha=ALPHA):
    """Mean binary focal loss with sigmoid activation (matches the torch module).

    pred / target may be any numeric dtype (bf16 logits, bf16/int masks, ...);
    both are upcast to f32 inside the kernel, so narrow inputs stream fewer
    HBM bytes.  Do NOT downcast in the wrapper (extra HBM pass).
    """
    assert pred.shape[0] == target.shape[0], "predictions and targets shapes don't match"
    assert pred.size == target.size, "predictions and targets sizes don't match"

    n = int(pred.size)
    pred_f = jnp.ravel(pred)
    targ_f = jnp.ravel(target)

    valid_rows, rem = divmod(n, LANES)

    # Pad (one extra copy) only when the flat size is not a multiple of 8*128.
    # Padded elements are both (a) masked out inside the kernel and (b) given
    # a zero-loss sentinel (pred=+40, target=1 -> pt==1 -> log(pt)==0).
    n_slab = _round_up(n, 8 * LANES)
    if n_slab != n:
        pred_f = jnp.pad(pred_f, (0, n_slab - n), constant_values=40.0)
        targ_f = jnp.pad(targ_f, (0, n_slab - n), constant_values=1)
    rows = n_slab // LANES                       # always a multiple of 8

    # Tile rows: big DMA tiles (multiple of CHUNK_ROWS, never exceeding rows)
    # for large inputs; the whole slab for small ones.
    if rows <= CHUNK_ROWS:
        tm = rows
        chunk = rows
    else:
        tm = min(TM_MAX, (rows // CHUNK_ROWS) * CHUNK_ROWS)
        chunk = CHUNK_ROWS

    tiles_needed = -(-rows // tm)
    num_splits = NUM_CORE_SPLITS if tiles_needed >= NUM_CORE_SPLITS else 1
    tiles_per_split = -(-tiles_needed // num_splits)
    # Mask whenever the grid covers rows that do not hold valid data.
    needs_mask = (n_slab != n) or (num_splits * tiles_per_split * tm != rows)

    pred2 = pred_f.reshape(rows, LANES)
    targ2 = targ_f.reshape(rows, LANES)

    kernel = functools.partial(
        _focal_partial_kernel,
        gamma=float(gamma), alpha=float(alpha), chunk=chunk,
        tiles_per_split=tiles_per_split, valid_rows=valid_rows, rem=rem,
        needs_mask=needs_mask)

    bytes_in = n * (pred2.dtype.itemsize + targ2.dtype.itemsize)
    cost = pl.CostEstimate(flops=20 * n, transcendentals=2 * n,
                           bytes_accessed=bytes_in + num_splits * 8 * LANES * 4)

    # TODO(synk): confirm via xprof that the leading "parallel" axis shards
    # across v7x's two TensorCores; switch to pltpu.CORE_PARALLEL if it does not.
    partials = pl.pallas_call(
        kernel,
        out_shape=jax.ShapeDtypeStruct((num_splits * 8, LANES), jnp.float32),
        grid=(num_splits, tiles_per_split),
        in_specs=[
            pl.BlockSpec((tm, LANES), lambda c, j: (c * tiles_per_split + j, 0)),
            pl.BlockSpec((tm, LANES), lambda c, j: (c * tiles_per_split + j, 0)),
        ],
        out_specs=pl.BlockSpec((8, LANES), lambda c, j: (c, 0)),
        compiler_params=pltpu.CompilerParams(
            dimension_semantics=("parallel", "arbitrary"),
            vmem_limit_bytes=VMEM_LIMIT_BYTES,
        ),
        cost_estimate=cost,
    )(pred2, targ2)

    return jnp.sum(partials) / jnp.float32(n)


def _reference(pred, target, gamma=GAMMA, alpha=ALPHA):
    p = jax.nn.sigmoid(pred.astype(jnp.float32))
    t = target.astype(jnp.float32)
    pt = p * t + (1.0 - p) * (1.0 - t)
    return jnp.mean(-alpha * jnp.log(pt) * (1.0 - pt) ** gamma)


if __name__ == "__main__":
    key = jax.random.PRNGKey(0)
    k1, k2, k3, k4, k5, k6 = jax.random.split(key, 6)

    # Primary case: NCHW logits + binary mask (lane-aligned, zero-copy path).
    pred = jax.random.normal(k1, (2, 4, 16, 16), dtype=jnp.float32)
    target = jax.random.bernoulli(k2, 0.5, (2, 4, 16, 16)).astype(jnp.float32)
    out = jax.block_until_ready(binary_focal_loss(pred, target))
    ref = _reference(pred, target)
    assert jnp.allclose(out, ref, rtol=1e-4, atol=1e-6), (out, ref)

    # Ragged case: exercises the in-kernel tail mask (n not a multiple of 1024).
    pred_r = jax.random.normal(k3, (2, 3, 15, 17), dtype=jnp.float32)
    target_r = jax.random.bernoulli(k4, 0.5, (2, 3, 15, 17)).astype(jnp.float32)
    out_r = jax.block_until_ready(binary_focal_loss(pred_r, target_r))
    ref_r = _reference(pred_r, target_r)
    assert jnp.allclose(out_r, ref_r, rtol=1e-4, atol=1e-6), (out_r, ref_r)

    # Multi-tile case: exercises the parallel split, chunked accumulation,
    # partially-out-of-bounds tiles, and bf16 input streaming.
    pred_m = jax.random.normal(k5, (2, 4, 128, 160), dtype=jnp.bfloat16)
    target_m = jax.random.bernoulli(k6, 0.5, (2, 4, 128, 160)).astype(jnp.float32)
    out_m = jax.block_until_ready(binary_focal_loss(pred_m, target_m))
    ref_m = _reference(pred_m, target_m)
    assert jnp.allclose(out_m, ref_m, rtol=1e-4, atol=1e-6), (out_m, ref_m)

    print("KERNEL_OK")
</pallas_src>

<mosaic_0001>
module attributes {stable_mosaic.version = 11 : i64} {
  func.func @_focal_partial_kernel(%arg0: i32, %arg1: i32, %arg2: memref<16x128xf32, #tpu.memory_space<vmem>>, %arg3: memref<16x128xf32, #tpu.memory_space<vmem>>, %arg4: memref<8x128xf32, #tpu.memory_space<vmem>>) attributes {dimension_semantics = [#tpu.dimension_semantics<parallel>, #tpu.dimension_semantics<arbitrary>], iteration_bounds = array<i64: 1, 1>, scalar_prefetch = 0 : i64, scratch_operands = 0 : i64, tpu.core_type = #tpu.core_type<tc>, window_params = [{transform_indices = @transform_0, window_bounds = array<i64: 16, 128>}, {transform_indices = @transform_1, window_bounds = array<i64: 16, 128>}, {transform_indices = @transform_2, window_bounds = array<i64: 8, 128>}]} {
    %c0_i32 = arith.constant 0 : i32
    %0 = arith.cmpi eq, %arg1, %c0_i32 : i32
    %1 = arith.extui %0 : i1 to i32
    %c0_i32_0 = arith.constant 0 : i32
    %2 = arith.cmpi ne, %1, %c0_i32_0 : i32
    scf.if %2 {
      %cst_15 = arith.constant 0.000000e+00 : f32
      %37 = vector.broadcast %cst_15 : f32 to vector<8x128xf32>
      %c0_16 = arith.constant 0 : index
      %c0_17 = arith.constant 0 : index
      %38 = vector.load %arg4[%c0_16, %c0_17] : memref<8x128xf32, #tpu.memory_space<vmem>>, vector<8x128xf32>
      tpu.vector_store %arg4[%c0_16, %c0_17], %37 {strides = array<i32>} : memref<8x128xf32, #tpu.memory_space<vmem>>, vector<8x128xf32>,
    } else {
    }
    %cst = arith.constant 0.000000e+00 : f32
    %3 = vector.broadcast %cst : f32 to vector<8x128xf32>
    %c0_i32_1 = arith.constant 0 : i32
    %c16_i32 = arith.constant 16 : i32
    %4 = arith.muli %c0_i32_1, %c16_i32 : i32
    %5 = tpu.assume_multiple %4, 16 : i32
    %6 = arith.index_cast %5 : i32 to index
    %c0 = arith.constant 0 : index
    %7 = vector.load %arg2[%6, %c0] : memref<16x128xf32, #tpu.memory_space<vmem>>, vector<16x128xf32>
    %8 = arith.index_cast %5 : i32 to index
    %c0_2 = arith.constant 0 : index
    %9 = vector.load %arg3[%8, %c0_2] : memref<16x128xf32, #tpu.memory_space<vmem>>, vector<16x128xf32>
    %cst_3 = arith.constant 0.000000e+00 : f32
    %10 = vector.broadcast %cst_3 : f32 to vector<16x128xf32>
    %11 = arith.subf %10, %7 : vector<16x128xf32>
    %12 = math.exp %11 : vector<16x128xf32>
    %cst_4 = arith.constant 1.000000e+00 : f32
    %13 = vector.broadcast %cst_4 : f32 to vector<16x128xf32>
    %14 = arith.addf %13, %12 : vector<16x128xf32>
    %cst_5 = arith.constant 1.000000e+00 : f32
    %15 = vector.broadcast %cst_5 : f32 to vector<16x128xf32>
    %16 = arith.divf %15, %14 : vector<16x128xf32>
    %17 = arith.mulf %16, %9 : vector<16x128xf32>
    %cst_6 = arith.constant 1.000000e+00 : f32
    %18 = vector.broadcast %cst_6 : f32 to vector<16x128xf32>
    %19 = arith.subf %18, %16 : vector<16x128xf32>
    %cst_7 = arith.constant 1.000000e+00 : f32
    %20 = vector.broadcast %cst_7 : f32 to vector<16x128xf32>
    %21 = arith.subf %20, %9 : vector<16x128xf32>
    %22 = arith.mulf %19, %21 : vector<16x128xf32>
    %23 = arith.addf %17, %22 : vector<16x128xf32>
    %cst_8 = arith.constant 1.000000e+00 : f32
    %24 = vector.broadcast %cst_8 : f32 to vector<16x128xf32>
    %25 = arith.subf %24, %23 : vector<16x128xf32>
    %26 = arith.mulf %25, %25 : vector<16x128xf32>
    %27 = math.log %23 : vector<16x128xf32>
    %cst_9 = arith.constant -2.500000e-01 : f32
    %28 = vector.broadcast %cst_9 : f32 to vector<16x128xf32>
    %29 = arith.mulf %28, %27 : vector<16x128xf32>
    %30 = arith.mulf %29, %26 : vector<16x128xf32>
    %31 = vector.shape_cast %30 : vector<16x128xf32> to vector<2x8x128xf32>
    %cst_10 = arith.constant dense<0.000000e+00> : vector<8x128xf32>
    %32 = vector.multi_reduction <add>, %31, %cst_10 [0] : vector<2x8x128xf32> to vector<8x128xf32>
    %33 = arith.addf %3, %32 : vector<8x128xf32>
    %c1_i32 = arith.constant 1 : i32
    %c0_11 = arith.constant 0 : index
    %c0_12 = arith.constant 0 : index
    %34 = vector.load %arg4[%c0_11, %c0_12] : memref<8x128xf32, #tpu.memory_space<vmem>>, vector<8x128xf32>
    %35 = arith.addf %34, %33 : vector<8x128xf32>
    %c0_13 = arith.constant 0 : index
    %c0_14 = arith.constant 0 : index
    %36 = vector.load %arg4[%c0_13, %c0_14] : memref<8x128xf32, #tpu.memory_space<vmem>>, vector<8x128xf32>
    tpu.vector_store %arg4[%c0_13, %c0_14], %35 {strides = array<i32>} : memref<8x128xf32, #tpu.memory_space<vmem>>, vector<8x128xf32>,
    return
  }
  func.func @transform_0(%arg0: i32, %arg1: i32) -> (i32, i32) {
    %c1_i32 = arith.constant 1 : i32
    %0 = arith.muli %arg0, %c1_i32 : i32
    %1 = arith.addi %0, %arg1 : i32
    %c0_i32 = arith.constant 0 : i32
    %c0_i32_0 = arith.constant 0 : i32
    return %1, %c0_i32 : i32, i32
  }
  func.func @transform_1(%arg0: i32, %arg1: i32) -> (i32, i32) {
    %c1_i32 = arith.constant 1 : i32
    %0 = arith.muli %arg0, %c1_i32 : i32
    %1 = arith.addi %0, %arg1 : i32
    %c0_i32 = arith.constant 0 : i32
    %c0_i32_0 = arith.constant 0 : i32
    return %1, %c0_i32 : i32, i32
  }
  func.func @transform_2(%arg0: i32, %arg1: i32) -> (i32, i32) {
    %c0_i32 = arith.constant 0 : i32
    %c0_i32_0 = arith.constant 0 : i32
    return %arg0, %c0_i32 : i32, i32
  }
}

</mosaic_0001>

<bundles_post_ra>
// kernel: tpu_custom_call.1
= control target key start
LH: loop header
LB: loop body
LE: loop exit
PB: predicated region body
PF: predicated region fallthrough
CT: control target
= control target key end

     0   :  { %7 = vsyncpa [#allocation3], 0  ;;  %s262_s0 = inlined_call_operand.hbm [shape: f32[16,128], index: 0, kind: input, shape index: {}]   ;;  %s263_s1 = inlined_call_operand.hbm [shape: f32[16,128], index: 1, kind: input, shape index: {}]   ;;  %s264_s2 = inlined_call_operand.hbm [shape: f32[8,128], index: 2, kind: output, shape index: {}]  }
   0x1   :  { %8 = vsyncpa [#allocation6], 0 }
   0x2   :  { %9 = vsyncpa [#allocation4], 0  ;;  %s206_s9 = smov [#allocation2]   ;;  %s134_s13 = scalar_lea.hbm %s262_s0, 256 }
   0x3   :  { %s19_s10 = sshll.u32 %s206_s9, 4  ;;  %p135_p0 = scmp.ne.s32.totalorder %s262_s0, %s134_s13  ;;  %s20_s10 = int_to_ptr.vmem [resolvable:$true] %s19_s10 }
   0x4   :  { %p138_p1 = scmp.lt.u32.totalorder %s134_s13, %s262_s0 }
   0x6   :  { %p140_p2 = pnand %p138_p1, %p135_p0 }
   0x8   :  { %143 = shalt.err (!%p140_p2)
}
   0x9   :  { %s144_s18 = scalar_lea.vmem %s20_s10, 256  ;;  %p149_p4 = scmp.lt.s32.totalorder %s20_s10, %s20_s10 }
   0xa   :  { %p145_p3 = scmp.ne.s32.totalorder %s20_s10, %s144_s18  ;;  %p150_p5 = scmp.lt.s32.totalorder %s144_s18, %s144_s18 }
   0xc   :  { %p151_p6 = por %p150_p5, %p149_p4 }
   0xe   :  { %p152_p7 = pnand %p151_p6, %p145_p3 }
  0x10   :  { %155 = shalt.err (!%p152_p7)
}
  0x11   :  { %s207_s19 = smov 128   ;;  %s208_s20 = smov 8  }
  0x12   :  { %25 = dma.hbm_to_vmem [thread:$0]  %s262_s0, 256, %s20_s10, [#allocation3], %s207_s19, %s207_s19, %s208_s20  }
  0x13   :  { %s209_s23 = smov [#allocation5]   ;;  %s156_s27 = scalar_lea.hbm %s263_s1, 256 }
  0x14   :  { %s35_s24 = sshll.u32 %s209_s23, 4  ;;  %p157_p8 = scmp.ne.s32.totalorder %s263_s1, %s156_s27  ;;  %s36_s24 = int_to_ptr.vmem [resolvable:$true] %s35_s24 }
  0x15   :  { %p160_p9 = scmp.lt.u32.totalorder %s156_s27, %s263_s1 }
  0x17   :  { %p162_p10 = pnand %p160_p9, %p157_p8 }
  0x19   :  { %165 = shalt.err (!%p162_p10)
}
  0x1a   :  { %s166_s4 = scalar_lea.vmem %s36_s24, 256  ;;  %p171_p12 = scmp.lt.s32.totalorder %s36_s24, %s36_s24 }
  0x1b   :  { %p167_p11 = scmp.ne.s32.totalorder %s36_s24, %s166_s4  ;;  %p172_p13 = scmp.lt.s32.totalorder %s166_s4, %s166_s4 }
  0x1d   :  { %p173_p0 = por %p172_p13, %p171_p12 }
  0x1f   :  { %p174_p1 = pnand %p173_p0, %p167_p11 }
  0x21   :  { %177 = shalt.err (!%p174_p1)
}
  0x22   :  { %41 = dma.hbm_to_vmem [thread:$0]  %s263_s1, 256, %s36_s24, [#allocation6], %s207_s19, %s207_s19, %s208_s20  }
  0x23   :  { %200 = dma.done.wait [#allocation3], 256  }
  0x24   :  { %201 = vsyncadd [#allocation3], 4294967040 }
  0x25   :  { %202 = dma.done.wait [#allocation6], 256  }
  0x26   :  { %203 = vsyncadd [#allocation6], 4294967040  ;;  %v57_v0 = vld [vmem:[#allocation2] sm:$0xff]  ;;  %v58_v1 = vld [vmem:[#allocation2 + $0x8] sm:$0xff]  ;;  %s210_s1 = smov [#allocation7]  }
  0x27   :  { %v61_v2 = vsub.f32 0.0, %v57_v0  ;;  %v62_v3 = vsub.f32 0.0, %v58_v1  ;;  %v59_v10 = vld [vmem:[#allocation5] sm:$0xff]  ;;  %v60_v11 = vld [vmem:[#allocation5 + $0x8] sm:$0xff]  ;;  %s106_s6 = sshll.u32 %s210_s1, 4  ;;  %s107_s6 = int_to_ptr.vmem [resolvable:$true] %s106_s6 }
  0x28   :  { %v77_v12 = vsub.f32 1.0, %v59_v10  ;;  %v78_v14 = vsub.f32 1.0, %v60_v11  ;;  %s178_s7 = scalar_lea.vmem %s107_s6, 128  ;;  %p183_p3 = scmp.lt.s32.totalorder %s107_s6, %s107_s6 }
  0x29   :  { %v63_v4 = vmul.f32 1.442695, %v61_v2  ;;  %v65_v5 = vmul.f32 1.442695, %v62_v3  ;;  %p179_p2 = scmp.ne.s32.totalorder %s107_s6, %s178_s7  ;;  %p184_p4 = scmp.lt.s32.totalorder %s178_s7, %s178_s7 }
  0x2b   :  { %122 = vpow2.f32 %v63_v4  ;;  %p185_p5 = por %p184_p4, %p183_p3 }
  0x2c   :  { %124 = vpow2.f32 %v65_v5 }
  0x2d   :  { %p186_p6 = pnand %p185_p5, %p179_p2 }
  0x35   :  { %v123_v6 = vpop.eup %122 }
  0x36   :  { %v125_v7 = vpop.eup %124  ;;  %v67_v8 = vadd.f32 1.0, %v123_v6 }
  0x37   :  { %v68_v9 = vadd.f32 1.0, %v125_v7 }
  0x38   :  { %126 = vrcp.f32 %v67_v8 }
  0x39   :  { %128 = vrcp.f32 %v68_v9 }
  0x42   :  { %v127_v13 = vpop.eup %126 }
  0x43   :  { %v129_v15 = vpop.eup %128  ;;  %v73_v16 = vmul.f32 %v127_v13, %v59_v10  ;;  %v75_v17 = vsub.f32 1.0, %v127_v13 }
  0x44   :  { %v74_v18 = vmul.f32 %v129_v15, %v60_v11  ;;  %v76_v19 = vsub.f32 1.0, %v129_v15 }
  0x45   :  { %v79_v20 = vmul.f32 %v77_v12, %v75_v17 }
  0x46   :  { %v80_v21 = vmul.f32 %v78_v14, %v76_v19 }
  0x47   :  { %v81_v22 = vadd.f32 %v79_v20, %v73_v16 }
  0x48   :  { %v82_v23 = vadd.f32 %v80_v21, %v74_v18 }
  0x49   :  { %130 = vlog2.f32 %v81_v22  ;;  %v83_v24 = vsub.f32 1.0, %v81_v22 }
  0x4a   :  { %132 = vlog2.f32 %v82_v23  ;;  %v84_v25 = vsub.f32 1.0, %v82_v23 }
  0x4b   :  { %v85_v28 = vmul.f32 %v83_v24, %v83_v24 }
  0x4c   :  { %v86_v30 = vmul.f32 %v84_v25, %v84_v25 }
  0x53   :  { %v131_v26 = vpop.eup %130 }
  0x54   :  { %v133_v27 = vpop.eup %132  ;;  %v88_v29 = vmul.f32 0.6931472, %v131_v26 }
  0x55   :  { %v90_v31 = vmul.f32 0.6931472, %v133_v27 }
  0x56   :  { %v91_v32 = vmul.f32 -0.25, %v88_v29 }
  0x57   :  { %v92_v33 = vmul.f32 -0.25, %v90_v31 }
  0x58   :  { %v93_v34 = vmul.f32 %v91_v32, %v85_v28 }
  0x59   :  { %v94_v35 = vmul.f32 %v92_v33, %v86_v30 }
  0x5b   :  { %v95_v36 = vadd.f32 %v94_v35, %v93_v34 }
  0x5d   :  { %99 = vst [vmem:[#allocation7] sm:$0xff] %v95_v36 }
  0x5e   :  { %189 = shalt.err (!%p186_p6)
}
  0x5f   :  { %s190_s10 = scalar_lea.hbm %s264_s2, 128 }
  0x60   :  { %p191_p7 = scmp.ne.s32.totalorder %s264_s2, %s190_s10  ;;  %p194_p8 = scmp.lt.u32.totalorder %s190_s10, %s264_s2 }
  0x62   :  { %p196_p9 = pnand %p194_p8, %p191_p7 }
  0x64   :  { %199 = shalt.err (!%p196_p9)
}
  0x65   :  { %109 = dma.vmem_to_hbm [thread:$0]  %s107_s6, 128, %s264_s2, [#allocation4]  }
  0x66   :  { %204 = dma.done.wait [#allocation4], 128  }
  0x67   :  { %205 = vsyncadd [#allocation4], 4294967168 }
  0x68   :  { %113 = vsyncpa [#allocation3], 1 }
  0x69   :  { %114 = vsyncpa [#allocation6], 1 }
  0x6a   :  { %115 = vsyncpa [#allocation4], 1 }

</bundles_post_ra>
